<compile_context>
chip_gen: v5e
topology: v5e:2x2
jax: 0.10.0
libtpu: 0.0.40
codegen_flags: <defaults>
</compile_context>

<pallas_src>
import math

import jax
import jax.numpy as jnp
from jax.experimental import pallas as pl
from jax.experimental.pallas import tpu as pltpu


# ----------------------------------------------------------------------------
# Fused kernel: one GRU time step + its prologue (cosine) and epilogue
# (linear+softmax+attend), grid = (num_block,)
# ----------------------------------------------------------------------------
def _fused_attractor_kernel(q_ref, k_ref, v_ref,
                            wi_ref, wh_ref, bi_ref, bh_ref,
                            wfc_ref, bfc_ref,
                            zo_ref, p_ref,
                            h_ref):
    """Views (leading time dim squeezed away by pl.Squeezed()):
      q_ref  : (Bn, 1, D)    query rows for this time step
      k_ref  : (Bn, A, D)    key^T rows for this time step
      v_ref  : (Bn, 2, M, A) value rows for this time step
      wi_ref : (A, 3A)  wh_ref : (A, 3A)  concatenated [r|z|n] GRU weights (transposed)
      bi_ref : (1, 3A)  bh_ref : (1, 3A)
      wfc_ref: (A, A)   bfc_ref: (1, A)
      zo_ref : (Bn, 2, M)    p_ref : (Bn, A)
      h_ref  : (Bn, A) VMEM scratch — GRU hidden state carried across grid steps
    """
    A = h_ref.shape[-1]

    # Zero-init the recurrent state on the first time step only.
    # NOTE: if a leading "parallel" batch grid axis is ever added (to use v7x's
    # second TensorCore at large batch), this init must key on the *time*
    # program_id instead of axis 0.
    @pl.when(pl.program_id(0) == 0)
    def _():
        h_ref[...] = jnp.zeros_like(h_ref)

    # ---- 1. cosine similarity along D --------------------------------------
    # query is broadcast along A inside the kernel (no expand_as copy in HBM),
    # and ||q|| is reduced once per row instead of A times.
    q = q_ref[...]                                            # (Bn, 1, D)
    k = k_ref[...]                                            # (Bn, A, D)
    eps = jnp.float32(1e-8)
    dot = jnp.sum(k * q, axis=-1)                             # (Bn, A)
    k_norm = jnp.sqrt(jnp.sum(k * k, axis=-1))                # (Bn, A)
    q_norm = jnp.sqrt(jnp.sum(q * q, axis=-1))                # (Bn, 1)
    x = dot / (jnp.maximum(q_norm, eps) * jnp.maximum(k_norm, eps))   # (Bn, A)

    # ---- 2. GRU step (PyTorch gate order r, z, n); 2 matmuls instead of 6 ---
    h = h_ref[...]                                            # (Bn, A)
    gi = jnp.dot(x, wi_ref[...], preferred_element_type=jnp.float32) + bi_ref[...]
    gh = jnp.dot(h, wh_ref[...], preferred_element_type=jnp.float32) + bh_ref[...]
    r = jax.nn.sigmoid(gi[:, 0 * A:1 * A] + gh[:, 0 * A:1 * A])
    z = jax.nn.sigmoid(gi[:, 1 * A:2 * A] + gh[:, 1 * A:2 * A])
    n = jnp.tanh(gi[:, 2 * A:3 * A] + r * gh[:, 2 * A:3 * A])
    h_new = (1.0 - z) * n + z * h
    h_ref[...] = h_new

    # ---- 3. Linear(A -> A, bias) + softmax (exp + approx reciprocal on EUP) -
    logits = jnp.dot(h_new, wfc_ref[...], preferred_element_type=jnp.float32) + bfc_ref[...]
    m = jnp.max(logits, axis=-1, keepdims=True)
    e = jnp.exp(logits - m)
    denom = jnp.sum(e, axis=-1, keepdims=True)
    p = e * pl.reciprocal(denom, approx=True)                 # (Bn, A)
    p_ref[...] = p

    # ---- 4. attend: Z_o[b,c,m] = sum_a value[b,c,m,a] * p[b,a] --------------
    v = v_ref[...]                                            # (Bn, 2, M, A)
    zo_ref[...] = jnp.sum(v * p[:, None, None, :], axis=-1)   # (Bn, 2, M)


# ----------------------------------------------------------------------------
# Wrapper (parameter re-layout + single pallas_call)
# ----------------------------------------------------------------------------
def rnn_attractor_forward(query, key, value, params, num_block=1):
    """query: (B, 1, D); key: (B, D, A); value: (B, 2, M, A).
    Returns (Z_o, p_attn) with Z_o: (B, 2, M), p_attn: (B, 2, A) — same as torch."""
    B, D, A = key.shape
    M = value.shape[-2]
    T = num_block
    assert B % T == 0, "num_block must divide the batch"
    Bn = B // T
    f32 = jnp.float32

    # key.transpose(-1,-2), then group rows into (T, Bn, ...) exactly like the
    # torch reshape scores.view([num_block, -1, num_align]).
    key_t = jnp.swapaxes(key, -1, -2).reshape(T, Bn, A, D).astype(f32)
    q = jnp.reshape(query, (T, Bn, 1, D)).astype(f32)    # NOT expanded along A
    v = value.reshape(T, Bn, 2, M, A).astype(f32)

    # GRU weights stay gate-concatenated ([r|z|n]); transpose so the kernel does x @ W.
    w_i = params["w_ih"].T.astype(f32)                   # (A, 3A)
    w_h = params["w_hh"].T.astype(f32)                   # (A, 3A)
    b_i = params["b_ih"].reshape(1, 3 * A).astype(f32)
    b_h = params["b_hh"].reshape(1, 3 * A).astype(f32)
    w_fc = params["w_fc"].T.astype(f32)                  # (A, A)
    b_fc = params["b_fc"].reshape(1, A).astype(f32)

    def const(*block):
        return pl.BlockSpec(block, lambda t, _n=len(block): (0,) * _n)

    z_o, p = pl.pallas_call(
        _fused_attractor_kernel,
        out_shape=(jax.ShapeDtypeStruct((T, Bn, 2, M), f32),
                   jax.ShapeDtypeStruct((T, Bn, A), f32)),
        grid=(T,),
        in_specs=[
            pl.BlockSpec((pl.Squeezed(), Bn, 1, D), lambda t: (t, 0, 0, 0)),      # query
            pl.BlockSpec((pl.Squeezed(), Bn, A, D), lambda t: (t, 0, 0, 0)),      # key^T
            pl.BlockSpec((pl.Squeezed(), Bn, 2, M, A), lambda t: (t, 0, 0, 0, 0)),  # value
            const(A, 3 * A),   # w_i
            const(A, 3 * A),   # w_h
            const(1, 3 * A),   # b_i
            const(1, 3 * A),   # b_h
            const(A, A),       # w_fc
            const(1, A),       # b_fc
        ],
        out_specs=(
            pl.BlockSpec((pl.Squeezed(), Bn, 2, M), lambda t: (t, 0, 0, 0)),      # Z_o
            pl.BlockSpec((pl.Squeezed(), Bn, A), lambda t: (t, 0, 0)),            # p
        ),
        scratch_shapes=[pltpu.VMEM((Bn, A), f32)],        # GRU hidden state carry
        # GRU recurrence over T is strictly sequential.  (For v7x's 2 TCs, add a
        # leading "parallel" batch grid axis once the batch is large enough.)
        compiler_params=pltpu.CompilerParams(dimension_semantics=("arbitrary",)),
    )(q, key_t, v, w_i, w_h, b_i, b_h, w_fc, b_fc)

    z_o = z_o.reshape(B, 2, M)
    p = p.reshape(B, A)
    # torch: p_attn = cat((p, p), 1) — duplicated channel; cheap broadcast here
    # instead of materializing + DMAing a duplicated tensor.
    p_attn = jnp.broadcast_to(p[:, None, :], (B, 2, A))
    return z_o, p_attn


# ----------------------------------------------------------------------------
# Pure-JAX reference (for the correctness check)
# ----------------------------------------------------------------------------
def reference_forward(query, key, value, params, num_block=1):
    A = key.shape[-1]
    key_t = jnp.swapaxes(key, -1, -2)
    q = jnp.broadcast_to(query, key_t.shape)
    dot = jnp.sum(q * key_t, -1)
    qn = jnp.maximum(jnp.sqrt(jnp.sum(q * q, -1)), 1e-8)
    kn = jnp.maximum(jnp.sqrt(jnp.sum(key_t * key_t, -1)), 1e-8)
    scores = (dot / (qn * kn)).reshape(num_block, -1, A)
    w_ih, w_hh, b_ih, b_hh = (params["w_ih"], params["w_hh"], params["b_ih"], params["b_hh"])
    h = jnp.zeros((scores.shape[1], A), jnp.float32)
    outs = []
    for t in range(scores.shape[0]):
        gi = scores[t] @ w_ih.T + b_ih
        gh = h @ w_hh.T + b_hh
        r = jax.nn.sigmoid(gi[:, :A] + gh[:, :A])
        z = jax.nn.sigmoid(gi[:, A:2 * A] + gh[:, A:2 * A])
        n = jnp.tanh(gi[:, 2 * A:] + r * gh[:, 2 * A:])
        h = (1.0 - z) * n + z * h
        outs.append(h)
    seq = jnp.stack(outs, 0).reshape(-1, A)
    p = jax.nn.softmax(seq @ params["w_fc"].T + params["b_fc"], axis=-1)
    p2 = jnp.stack([p, p], axis=1)
    z_o = jnp.einsum("ncma,nca->ncm", value, p2)
    return z_o, p2


if __name__ == "__main__":
    # Small shapes consistent with the module's forward.
    A = 16         # num_align
    D = 8          # feature dim reduced by cosine similarity
    B = 4          # leading batch of key/query/value
    NUM_BLOCK = 2  # GRU time steps
    M = 8          # value rows

    root = jax.random.PRNGKey(0)
    ks = jax.random.split(root, 9)

    query = jax.random.normal(ks[0], (B, 1, D), jnp.float32)   # expand_as(key.T) -> (B, A, D)
    key_in = jax.random.normal(ks[1], (B, D, A), jnp.float32)
    value = jax.random.normal(ks[2], (B, 2, M, A), jnp.float32)

    bound = 1.0 / math.sqrt(A)
    params = {
        # GRU (PyTorch layout: gates stacked [r, z, n])
        "w_ih": jax.random.uniform(ks[3], (3 * A, A), jnp.float32, -bound, bound),
        "w_hh": jax.random.uniform(ks[4], (3 * A, A), jnp.float32, -bound, bound),
        "b_ih": jax.random.uniform(ks[5], (3 * A,), jnp.float32, -bound, bound),
        "b_hh": jax.random.uniform(ks[6], (3 * A,), jnp.float32, -bound, bound),
        # Outputer FC (Linear A->A, bias=True) + softmax
        "w_fc": jax.random.uniform(ks[7], (A, A), jnp.float32, -bound, bound),
        "b_fc": jax.random.uniform(ks[8], (A,), jnp.float32, -bound, bound),
    }

    z_o, p_attn = rnn_attractor_forward(query, key_in, value, params, num_block=NUM_BLOCK)
    jax.block_until_ready((z_o, p_attn))

    z_ref, p_ref = reference_forward(query, key_in, value, params, num_block=NUM_BLOCK)
    assert z_o.shape == (B, 2, M) and p_attn.shape == (B, 2, A)
    # Tolerance is looser than float32 exact because the kernel's softmax uses the
    # EUP approximate reciprocal (pl.reciprocal(..., approx=True)); errors from a
    # wrong gate order / wrong fusion would be orders of magnitude larger.
    assert jnp.allclose(z_o, z_ref, atol=2e-3, rtol=2e-3)
    assert jnp.allclose(p_attn, p_ref, atol=2e-3, rtol=2e-3)

    print("KERNEL_OK")
</pallas_src>

<mosaic_0001>
module attributes {stable_mosaic.version = 11 : i64} {
  func.func @_fused_attractor_kernel(%arg0: i32, %arg1: memref<1x2x1x8xf32, #tpu.memory_space<vmem>>, %arg2: memref<1x2x16x8xf32, #tpu.memory_space<vmem>>, %arg3: memref<1x2x2x8x16xf32, #tpu.memory_space<vmem>>, %arg4: memref<16x48xf32, #tpu.memory_space<vmem>>, %arg5: memref<16x48xf32, #tpu.memory_space<vmem>>, %arg6: memref<1x48xf32, #tpu.memory_space<vmem>>, %arg7: memref<1x48xf32, #tpu.memory_space<vmem>>, %arg8: memref<16x16xf32, #tpu.memory_space<vmem>>, %arg9: memref<1x16xf32, #tpu.memory_space<vmem>>, %arg10: memref<1x2x2x8xf32, #tpu.memory_space<vmem>>, %arg11: memref<1x2x16xf32, #tpu.memory_space<vmem>>, %arg12: memref<2x16xf32, #tpu.memory_space<vmem>>) attributes {dimension_semantics = [#tpu.dimension_semantics<arbitrary>], iteration_bounds = array<i64: 2>, scalar_prefetch = 0 : i64, scratch_operands = 1 : i64, tpu.core_type = #tpu.core_type<tc>, window_params = [{transform_indices = @transform_0, window_bounds = array<i64: 1, 2, 1, 8>}, {transform_indices = @transform_1, window_bounds = array<i64: 1, 2, 16, 8>}, {transform_indices = @transform_2, window_bounds = array<i64: 1, 2, 2, 8, 16>}, {pipeline_mode = #tpu.pipeline_mode<synchronous>, transform_indices = @transform_3, window_bounds = array<i64: 16, 48>}, {pipeline_mode = #tpu.pipeline_mode<synchronous>, transform_indices = @transform_4, window_bounds = array<i64: 16, 48>}, {pipeline_mode = #tpu.pipeline_mode<synchronous>, transform_indices = @transform_5, window_bounds = array<i64: 1, 48>}, {pipeline_mode = #tpu.pipeline_mode<synchronous>, transform_indices = @transform_6, window_bounds = array<i64: 1, 48>}, {pipeline_mode = #tpu.pipeline_mode<synchronous>, transform_indices = @transform_7, window_bounds = array<i64: 16, 16>}, {pipeline_mode = #tpu.pipeline_mode<synchronous>, transform_indices = @transform_8, window_bounds = array<i64: 1, 16>}, {transform_indices = @transform_9, window_bounds = array<i64: 1, 2, 2, 8>}, {transform_indices = @transform_10, window_bounds = array<i64: 1, 2, 16>}]} {
    %c0_i32 = arith.constant 0 : i32
    %0 = arith.cmpi eq, %arg0, %c0_i32 : i32
    %1 = arith.extui %0 : i1 to i32
    %c0_i32_0 = arith.constant 0 : i32
    %2 = arith.cmpi ne, %1, %c0_i32_0 : i32
    scf.if %2 {
      %cst_49 = arith.constant 0.000000e+00 : f32
      %88 = vector.broadcast %cst_49 : f32 to vector<2x16xf32>
      %c0_50 = arith.constant 0 : index
      %c0_51 = arith.constant 0 : index
      %89 = vector.load %arg12[%c0_50, %c0_51] : memref<2x16xf32, #tpu.memory_space<vmem>>, vector<2x16xf32>
      tpu.vector_store %arg12[%c0_50, %c0_51], %88 {strides = array<i32>} : memref<2x16xf32, #tpu.memory_space<vmem>>, vector<2x16xf32>,
    } else {
    }
    %c0 = arith.constant 0 : index
    %c0_1 = arith.constant 0 : index
    %c0_2 = arith.constant 0 : index
    %c0_3 = arith.constant 0 : index
    %3 = vector.load %arg1[%c0, %c0_1, %c0_2, %c0_3] : memref<1x2x1x8xf32, #tpu.memory_space<vmem>>, vector<1x2x1x8xf32>
    %4 = vector.shape_cast %3 : vector<1x2x1x8xf32> to vector<2x1x8xf32>
    %c0_4 = arith.constant 0 : index
    %c0_5 = arith.constant 0 : index
    %c0_6 = arith.constant 0 : index
    %c0_7 = arith.constant 0 : index
    %5 = vector.load %arg2[%c0_4, %c0_5, %c0_6, %c0_7] : memref<1x2x16x8xf32, #tpu.memory_space<vmem>>, vector<1x2x16x8xf32>
    %6 = vector.shape_cast %5 : vector<1x2x16x8xf32> to vector<2x16x8xf32>
    %7 = vector.broadcast %4 : vector<2x1x8xf32> to vector<2x16x8xf32>
    %8 = arith.mulf %6, %7 : vector<2x16x8xf32>
    %cst = arith.constant dense<0.000000e+00> : vector<2x16xf32>
    %9 = vector.multi_reduction <add>, %8, %cst [2] : vector<2x16x8xf32> to vector<2x16xf32>
    %10 = arith.mulf %6, %6 : vector<2x16x8xf32>
    %cst_8 = arith.constant dense<0.000000e+00> : vector<2x16xf32>
    %11 = vector.multi_reduction <add>, %10, %cst_8 [2] : vector<2x16x8xf32> to vector<2x16xf32>
    %12 = math.sqrt %11 : vector<2x16xf32>
    %13 = arith.mulf %4, %4 : vector<2x1x8xf32>
    %cst_9 = arith.constant dense<0.000000e+00> : vector<2x1xf32>
    %14 = vector.multi_reduction <add>, %13, %cst_9 [2] : vector<2x1x8xf32> to vector<2x1xf32>
    %15 = math.sqrt %14 : vector<2x1xf32>
    %cst_10 = arith.constant 9.99999993E-9 : f32
    %16 = vector.broadcast %cst_10 : f32 to vector<2x1xf32>
    %17 = arith.maximumf %15, %16 : vector<2x1xf32>
    %cst_11 = arith.constant 9.99999993E-9 : f32
    %18 = vector.broadcast %cst_11 : f32 to vector<2x16xf32>
    %19 = arith.maximumf %12, %18 : vector<2x16xf32>
    %20 = vector.broadcast %17 : vector<2x1xf32> to vector<2x16xf32>
    %21 = arith.mulf %20, %19 : vector<2x16xf32>
    %22 = arith.divf %9, %21 : vector<2x16xf32>
    %c0_12 = arith.constant 0 : index
    %c0_13 = arith.constant 0 : index
    %23 = vector.load %arg12[%c0_12, %c0_13] : memref<2x16xf32, #tpu.memory_space<vmem>>, vector<2x16xf32>
    %c0_14 = arith.constant 0 : index
    %c0_15 = arith.constant 0 : index
    %24 = vector.load %arg4[%c0_14, %c0_15] : memref<16x48xf32, #tpu.memory_space<vmem>>, vector<16x48xf32>
    %cst_16 = arith.constant dense<0.000000e+00> : vector<2x48xf32>
    %25 = tpu.matmul %22, %24, %cst_16 {dimension_numbers = #tpu.dot_dimension_numbers<[1], [0], [0], [1], [0, 0, 1, 1], [], []>} : vector<2x16xf32>, vector<16x48xf32>, vector<2x48xf32> -> vector<2x48xf32>
    %c0_17 = arith.constant 0 : index
    %c0_18 = arith.constant 0 : index
    %26 = vector.load %arg6[%c0_17, %c0_18] : memref<1x48xf32, #tpu.memory_space<vmem>>, vector<1x48xf32>
    %27 = vector.broadcast %26 : vector<1x48xf32> to vector<2x48xf32>
    %28 = arith.addf %25, %27 : vector<2x48xf32>
    %c0_19 = arith.constant 0 : index
    %c0_20 = arith.constant 0 : index
    %29 = vector.load %arg5[%c0_19, %c0_20] : memref<16x48xf32, #tpu.memory_space<vmem>>, vector<16x48xf32>
    %cst_21 = arith.constant dense<0.000000e+00> : vector<2x48xf32>
    %30 = tpu.matmul %23, %29, %cst_21 {dimension_numbers = #tpu.dot_dimension_numbers<[1], [0], [0], [1], [0, 0, 1, 1], [], []>} : vector<2x16xf32>, vector<16x48xf32>, vector<2x48xf32> -> vector<2x48xf32>
    %c0_22 = arith.constant 0 : index
    %c0_23 = arith.constant 0 : index
    %31 = vector.load %arg7[%c0_22, %c0_23] : memref<1x48xf32, #tpu.memory_space<vmem>>, vector<1x48xf32>
    %32 = vector.broadcast %31 : vector<1x48xf32> to vector<2x48xf32>
    %33 = arith.addf %30, %32 : vector<2x48xf32>
    %34 = vector.extract_strided_slice %28 {offsets = [0, 0], sizes = [2, 16], strides = [1, 1]} : vector<2x48xf32> to vector<2x16xf32>
    %35 = vector.extract_strided_slice %33 {offsets = [0, 0], sizes = [2, 16], strides = [1, 1]} : vector<2x48xf32> to vector<2x16xf32>
    %36 = arith.addf %34, %35 : vector<2x16xf32>
    %37 = arith.negf %36 : vector<2x16xf32>
    %38 = math.exp %37 : vector<2x16xf32>
    %cst_24 = arith.constant 1.000000e+00 : f32
    %39 = vector.broadcast %cst_24 : f32 to vector<2x16xf32>
    %40 = arith.addf %39, %38 : vector<2x16xf32>
    %41 = arith.divf %39, %40 : vector<2x16xf32>
    %42 = vector.extract_strided_slice %28 {offsets = [0, 16], sizes = [2, 16], strides = [1, 1]} : vector<2x48xf32> to vector<2x16xf32>
    %43 = vector.extract_strided_slice %33 {offsets = [0, 16], sizes = [2, 16], strides = [1, 1]} : vector<2x48xf32> to vector<2x16xf32>
    %44 = arith.addf %42, %43 : vector<2x16xf32>
    %45 = arith.negf %44 : vector<2x16xf32>
    %46 = math.exp %45 : vector<2x16xf32>
    %cst_25 = arith.constant 1.000000e+00 : f32
    %47 = vector.broadcast %cst_25 : f32 to vector<2x16xf32>
    %48 = arith.addf %47, %46 : vector<2x16xf32>
    %49 = arith.divf %47, %48 : vector<2x16xf32>
    %50 = vector.extract_strided_slice %28 {offsets = [0, 32], sizes = [2, 16], strides = [1, 1]} : vector<2x48xf32> to vector<2x16xf32>
    %51 = vector.extract_strided_slice %33 {offsets = [0, 32], sizes = [2, 16], strides = [1, 1]} : vector<2x48xf32> to vector<2x16xf32>
    %52 = arith.mulf %41, %51 : vector<2x16xf32>
    %53 = arith.addf %50, %52 : vector<2x16xf32>
    %54 = math.tanh %53 : vector<2x16xf32>
    %cst_26 = arith.constant 1.000000e+00 : f32
    %55 = vector.broadcast %cst_26 : f32 to vector<2x16xf32>
    %56 = arith.subf %55, %49 : vector<2x16xf32>
    %57 = arith.mulf %56, %54 : vector<2x16xf32>
    %58 = arith.mulf %49, %23 : vector<2x16xf32>
    %59 = arith.addf %57, %58 : vector<2x16xf32>
    %c0_27 = arith.constant 0 : index
    %c0_28 = arith.constant 0 : index
    %60 = vector.load %arg12[%c0_27, %c0_28] : memref<2x16xf32, #tpu.memory_space<vmem>>, vector<2x16xf32>
    tpu.vector_store %arg12[%c0_27, %c0_28], %59 {strides = array<i32>} : memref<2x16xf32, #tpu.memory_space<vmem>>, vector<2x16xf32>,
    %c0_29 = arith.constant 0 : index
    %c0_30 = arith.constant 0 : index
    %61 = vector.load %arg8[%c0_29, %c0_30] : memref<16x16xf32, #tpu.memory_space<vmem>>, vector<16x16xf32>
    %cst_31 = arith.constant dense<0.000000e+00> : vector<2x16xf32>
    %62 = tpu.matmul %59, %61, %cst_31 {dimension_numbers = #tpu.dot_dimension_numbers<[1], [0], [0], [1], [0, 0, 1, 1], [], []>} : vector<2x16xf32>, vector<16x16xf32>, vector<2x16xf32> -> vector<2x16xf32>
    %c0_32 = arith.constant 0 : index
    %c0_33 = arith.constant 0 : index
    %63 = vector.load %arg9[%c0_32, %c0_33] : memref<1x16xf32, #tpu.memory_space<vmem>>, vector<1x16xf32>
    %64 = vector.broadcast %63 : vector<1x16xf32> to vector<2x16xf32>
    %65 = arith.addf %62, %64 : vector<2x16xf32>
    %cst_34 = arith.constant dense<0xFF800000> : vector<2xf32>
    %66 = vector.multi_reduction <maximumf>, %65, %cst_34 [1] : vector<2x16xf32> to vector<2xf32>
    %67 = vector.shape_cast %66 : vector<2xf32> to vector<2x1xf32>
    %68 = vector.broadcast %67 : vector<2x1xf32> to vector<2x16xf32>
    %69 = arith.subf %65, %68 : vector<2x16xf32>
    %70 = math.exp %69 : vector<2x16xf32>
    %cst_35 = arith.constant dense<0.000000e+00> : vector<2xf32>
    %71 = vector.multi_reduction <add>, %70, %cst_35 [1] : vector<2x16xf32> to vector<2xf32>
    %72 = vector.shape_cast %71 : vector<2xf32> to vector<2x1xf32>
    %73 = tpu.reciprocal %72 {approx = true} : vector<2x1xf32> -> vector<2x1xf32>
    %74 = vector.broadcast %73 : vector<2x1xf32> to vector<2x16xf32>
    %75 = arith.mulf %70, %74 : vector<2x16xf32>
    %c0_36 = arith.constant 0 : index
    %c0_37 = arith.constant 0 : index
    %c0_38 = arith.constant 0 : index
    %76 = vector.load %arg11[%c0_36, %c0_37, %c0_38] : memref<1x2x16xf32, #tpu.memory_space<vmem>>, vector<1x2x16xf32>
    %77 = vector.shape_cast %76 : vector<1x2x16xf32> to vector<2x16xf32>
    %78 = vector.shape_cast %75 : vector<2x16xf32> to vector<1x2x16xf32>
    tpu.vector_store %arg11[%c0_36, %c0_37, %c0_38], %78 {strides = array<i32>} : memref<1x2x16xf32, #tpu.memory_space<vmem>>, vector<1x2x16xf32>,
    %c0_39 = arith.constant 0 : index
    %c0_40 = arith.constant 0 : index
    %c0_41 = arith.constant 0 : index
    %c0_42 = arith.constant 0 : index
    %c0_43 = arith.constant 0 : index
    %79 = vector.load %arg3[%c0_39, %c0_40, %c0_41, %c0_42, %c0_43] : memref<1x2x2x8x16xf32, #tpu.memory_space<vmem>>, vector<1x2x2x8x16xf32>
    %80 = vector.shape_cast %79 : vector<1x2x2x8x16xf32> to vector<2x2x8x16xf32>
    %81 = vector.shape_cast %75 : vector<2x16xf32> to vector<2x1x1x16xf32>
    %82 = vector.broadcast %81 : vector<2x1x1x16xf32> to vector<2x2x8x16xf32>
    %83 = arith.mulf %80, %82 : vector<2x2x8x16xf32>
    %cst_44 = arith.constant dense<0.000000e+00> : vector<2x2x8xf32>
    %84 = vector.multi_reduction <add>, %83, %cst_44 [3] : vector<2x2x8x16xf32> to vector<2x2x8xf32>
    %c0_45 = arith.constant 0 : index
    %c0_46 = arith.constant 0 : index
    %c0_47 = arith.constant 0 : index
    %c0_48 = arith.constant 0 : index
    %85 = vector.load %arg10[%c0_45, %c0_46, %c0_47, %c0_48] : memref<1x2x2x8xf32, #tpu.memory_space<vmem>>, vector<1x2x2x8xf32>
    %86 = vector.shape_cast %85 : vector<1x2x2x8xf32> to vector<2x2x8xf32>
    %87 = vector.shape_cast %84 : vector<2x2x8xf32> to vector<1x2x2x8xf32>
    tpu.vector_store %arg10[%c0_45, %c0_46, %c0_47, %c0_48], %87 {strides = array<i32>} : memref<1x2x2x8xf32, #tpu.memory_space<vmem>>, vector<1x2x2x8xf32>,
    return
  }
  func.func @transform_0(%arg0: i32) -> (i32, i32, i32, i32) {
    %c0_i32 = arith.constant 0 : i32
    %c0_i32_0 = arith.constant 0 : i32
    %c0_i32_1 = arith.constant 0 : i32
    %c0_i32_2 = arith.constant 0 : i32
    return %arg0, %c0_i32, %c0_i32_0, %c0_i32_1 : i32, i32, i32, i32
  }
  func.func @transform_1(%arg0: i32) -> (i32, i32, i32, i32) {
    %c0_i32 = arith.constant 0 : i32
    %c0_i32_0 = arith.constant 0 : i32
    %c0_i32_1 = arith.constant 0 : i32
    %c0_i32_2 = arith.constant 0 : i32
    return %arg0, %c0_i32, %c0_i32_0, %c0_i32_1 : i32, i32, i32, i32
  }
  func.func @transform_2(%arg0: i32) -> (i32, i32, i32, i32, i32) {
    %c0_i32 = arith.constant 0 : i32
    %c0_i32_0 = arith.constant 0 : i32
    %c0_i32_1 = arith.constant 0 : i32
    %c0_i32_2 = arith.constant 0 : i32
    %c0_i32_3 = arith.constant 0 : i32
    return %arg0, %c0_i32, %c0_i32_0, %c0_i32_1, %c0_i32_2 : i32, i32, i32, i32, i32
  }
  func.func @transform_3(%arg0: i32) -> (i32, i32) {
    %c0_i32 = arith.constant 0 : i32
    %c0_i32_0 = arith.constant 0 : i32
    %c0_i32_1 = arith.constant 0 : i32
    return %c0_i32, %c0_i32_0 : i32, i32
  }
  func.func @transform_4(%arg0: i32) -> (i32, i32) {
    %c0_i32 = arith.constant 0 : i32
    %c0_i32_0 = arith.constant 0 : i32
    %c0_i32_1 = arith.constant 0 : i32
    return %c0_i32, %c0_i32_0 : i32, i32
  }
  func.func @transform_5(%arg0: i32) -> (i32, i32) {
    %c0_i32 = arith.constant 0 : i32
    %c0_i32_0 = arith.constant 0 : i32
    %c0_i32_1 = arith.constant 0 : i32
    return %c0_i32, %c0_i32_0 : i32, i32
  }
  func.func @transform_6(%arg0: i32) -> (i32, i32) {
    %c0_i32 = arith.constant 0 : i32
    %c0_i32_0 = arith.constant 0 : i32
    %c0_i32_1 = arith.constant 0 : i32
    return %c0_i32, %c0_i32_0 : i32, i32
  }
  func.func @transform_7(%arg0: i32) -> (i32, i32) {
    %c0_i32 = arith.constant 0 : i32
    %c0_i32_0 = arith.constant 0 : i32
    %c0_i32_1 = arith.constant 0 : i32
    return %c0_i32, %c0_i32_0 : i32, i32
  }
  func.func @transform_8(%arg0: i32) -> (i32, i32) {
    %c0_i32 = arith.constant 0 : i32
    %c0_i32_0 = arith.constant 0 : i32
    %c0_i32_1 = arith.constant 0 : i32
    return %c0_i32, %c0_i32_0 : i32, i32
  }
  func.func @transform_9(%arg0: i32) -> (i32, i32, i32, i32) {
    %c0_i32 = arith.constant 0 : i32
    %c0_i32_0 = arith.constant 0 : i32
    %c0_i32_1 = arith.constant 0 : i32
    %c0_i32_2 = arith.constant 0 : i32
    return %arg0, %c0_i32, %c0_i32_0, %c0_i32_1 : i32, i32, i32, i32
  }
  func.func @transform_10(%arg0: i32) -> (i32, i32, i32) {
    %c0_i32 = arith.constant 0 : i32
    %c0_i32_0 = arith.constant 0 : i32
    %c0_i32_1 = arith.constant 0 : i32
    return %arg0, %c0_i32, %c0_i32_0 : i32, i32, i32
  }
}

</mosaic_0001>

<bundles_post_ra>
// kernel: tpu_custom_call.1
= control target key start
LH: loop header
LB: loop body
LE: loop exit
PB: predicated region body
PF: predicated region fallthrough
CT: control target
= control target key end

     0   :  { %s1709_s0 = inlined_call_operand.hbm [shape: f32[2,2,1,8], index: 0, kind: input, shape index: {}]   ;;  %s1710_s1 = inlined_call_operand.vmem [shape: f32[2,2,16,8], index: 1, kind: input, shape index: {}]   ;;  %s1711_s2 = inlined_call_operand.vmem [shape: f32[2,2,2,8,16], index: 2, kind: input, shape index: {}]   ;;  %s1712_s3 = inlined_call_operand.vmem [shape: f32[16,48], index: 3, kind: input, shape index: {}]   ;;  %s1713_s4 = inlined_call_operand.vmem [shape: f32[16,48], index: 4, kind: input, shape index: {}]   ;;  %s1714_s5 = inlined_call_operand.vmem [shape: f32[1,48], index: 5, kind: input, shape index: {}]   ;;  %s1715_s6 = inlined_call_operand.vmem [shape: f32[1,48], index: 6, kind: input, shape index: {}]   ;;  %s1716_s7 = inlined_call_operand.hbm [shape: f32[16,16], index: 7, kind: input, shape index: {}]   ;;  %s1717_s8 = inlined_call_operand.vmem [shape: f32[1,16], index: 8, kind: input, shape index: {}]   ;;  %s1718_s9 = inlined_call_operand.hbm [shape: f32[2,2,2,8], index: 9, kind: output, shape index: {0}]   ;;  %s1719_s10 = inlined_call_operand.hbm [shape: f32[2,2,16], index: 10, kind: output, shape index: {1}]  }
   0x1   :  { %1723 = sst [smem:[#allocation18_spill]] %s1716_s7 }
   0x2   :  { %16 = vsyncpa [#allocation4], 0 }
   0x3   :  { %18 = vsyncpa [#allocation4 + $0x1], 0 }
   0x4   :  { %19 = vsyncpa [#allocation7], 0 }
   0x5   :  { %20 = vsyncpa [#allocation5], 0 }
   0x6   :  { %22 = vsyncpa [#allocation5 + $0x1], 0 }
   0x7   :  { %23 = vsyncpa [#allocation10], 0 }
   0x8   :  { %25 = vsyncpa [#allocation10 + $0x1], 0  ;;  %s1397_s13 = smov 0   ;;  %s1399_s14 = smov 0  }
   0x9   :  { %s1401_s15 = smov 0   ;;  %s1403_s16 = smov 0  }
   0xa LB: > { %1724 = sst [smem:[#allocation15_spill]] %s1325_s15  ;;  %s1418_s17 = sadd.s32 4294967295, %s1329_s16   ;;  %s1329_s16 = sphi %s1403_s16, %s1739_s16   ;;  %s1325_s15 = sphi %s1401_s15, %s1741_s15   ;;  %s1321_s14 = sphi %s1399_s14, %s1743_s14   ;;  %s1317_s13 = sphi %s1397_s13, %s1742_s13  }
   0xb   : > { %s1030_s18 = sadd.s32 4294967294, %s1329_s16   ;;  %p51_p0 = scmp.ne.s32.totalorder %s1321_s14, %s1317_s13 }
   0xc   : > { %p52_p1 = scmp.eq.s32.totalorder %s1418_s17, 0  ;;  %p253_p2 = scmp.eq.s32.totalorder %s1418_s17, 1 }
   0xd   : > { %p259_p3 = scmp.eq.s32.totalorder %s1030_s18, 1  ;;  %p1031_p5 = scmp.ge.s32.totalorder %s1329_s16, 1 }
   0xe   : > { %p1427_p4 = por %p52_p1, %p51_p0  ;;  %p292_p7 = scmp.lt.s32.totalorder %s1329_s16, 3 }
   0xf   : > { %p1432_p6 = por %p259_p3, %p51_p0  ;;  %s1727_s7 = sld [smem:[#allocation18_spill]] }
  0x10   : > { %p1441_p9 = pnand %p1031_p5, %p292_p7  ;;  %s1331_s25 = smov [#allocation6]  }
  0x11   : > { %s317_s26 = sshll.u32 %s1331_s25, 4  ;;  %s1451_s27 = sadd.s32 1, %s1329_s16   ;;  %s318_s26 = int_to_ptr.vmem [resolvable:$true] %s317_s26 }
  0x12   : > { %p1070_p10 = pneg %p1441_p9  ;;  %1729 = sst [smem:[#allocation16_spill]] %s1451_s27 }
  0x13   : > { %s1332_s28 = smov 128   ;;  %s1333_s29 = smov 8  }
  0x14   : > { %p1071_p11 = pnand %p1070_p10, %p52_p1  ;;  %s35_s30 = ssub.s32 %s1329_s16, %s1451_s27 }
  0x15   : > { %s315_s23 = sshll.u32 %s1727_s7, 4  ;;  %s38_s11 = sadd.s32 1, %s1325_s15  ;;  %s316_s23 = int_to_ptr.hbm [resolvable:$true] %s315_s23 }
  0x16   : > { %1073 = dma.hbm_to_vmem [thread:$0]  (!%p1071_p11), %s316_s23, 256, %s318_s26, [#allocation7], %s1332_s28, %s1332_s28, %s1333_s29  }
  0x17   : > { %p36_p13 = scmp.eq.s32.totalorder %s35_s30, 0  ;;  %p45_p0 = scmp.ne.s32.totalorder %s1325_s15, %s1321_s14 }
  0x18   : > { %p46_p3 = scmp.eq.s32.totalorder %s1329_s16, 0  ;;  %p1086_p5 = scmp.lt.s32.totalorder %s1329_s16, 2 }
  0x19   : > { %s1461_s12 = scalar_select %p36_p13, %s1325_s15, %s38_s11  }
  0x1a   : > { %p47_p7 = por %p46_p3, %p45_p0  ;;  %p1465_p10 = por %p253_p2, %p45_p0 }
  0x1b   : > { %1730 = sst [smem:[#allocation17_spill]] %s1461_s12  ;;  %s334_s21 = sand.u32 1, %s1325_s15  }
  0x1c   : > { %s1035_s22 = sshll.u32 %s1329_s16, 1  ;;  %s1034_s25 = sshll.u32 %s334_s21, 1 }
  0x1d   : > { %s342_s26 = scalar_lea.hbm %s1709_s0, %s1035_s22  ;;  %s338_s29 = scalar_lea.vmem [#allocation3], %s1034_s25 }
  0x1e   : > { %s343_s28 = sshll.u32 %s342_s26, 4  ;;  %s345_s30 = sshll.u32 %s338_s29, 4  ;;  %s344_s28 = int_to_ptr.hbm [resolvable:$true] %s343_s28  ;;  %s346_s30 = int_to_ptr.vmem [resolvable:$true] %s345_s30 }
  0x1f   : > { %p1476_p11 = pnand %p1086_p5, %p47_p7  ;;  %s335_s12 = scalar_lea.sflag [#allocation4], %s334_s21 }
  0x20   : > { %s1197_s27 = sshra.s32 %s344_s28, 4  ;;  %s1204_s25 = scalar_lea.hbm %s1709_s0, 4  ;;  %s1198_s27 = int_to_ptr.hbm [resolvable:$true] %s1197_s27 }
  0x21   : > { %s1199_s15 = scalar_lea.hbm %s1198_s27, 2  ;;  %p1201_p13 = pneg %p1476_p11 }
  0x22   : > { %p1200_p2 = scmp.ne.s32.totalorder %s1198_s27, %s1199_s15  ;;  %p1205_p5 = scmp.lt.s32.totalorder %s1198_s27, %s1709_s0 }
  0x23   : > { %p1206_p7 = scmp.lt.s32.totalorder %s1204_s25, %s1199_s15 }
  0x24   : > { %p1202_p0 = pnand %p1201_p13, %p1200_p2 }
  0x25   : > { %p1207_p12 = por %p1206_p7, %p1205_p5 }
  0x26   : > { %p1203_p3 = pneg %p1202_p0 }
  0x28   : > { %p1208_p8 = pnand %p1207_p12, %p1203_p3 }
  0x2a   : > { %1211 = shalt.err (!%p1208_p8)
}
  0x2b   : > { %s1334_s21 = smov 16   ;;  %s1335_s29 = smov 1  }
  0x2c   : > { %1077 = dma.hbm_to_vmem [thread:$0]  (!%p1476_p11), %s344_s28, 32, %s346_s30, %s335_s12, %s1334_s21, %s1334_s21, %s1335_s29  }
  0x2d   : > { %373 = sbr.rel (%p1441_p9) target bundleno = 1265 (0x4f1), region = 56  ;;  %s1493_s7 = sand.u32 (!%p1441_p9), 1, %s1321_s14  }
  0x2e   : > { %s1037_s22 = sshll.u32 (!%p1441_p9), %s1493_s7, 1  ;;  %s376_s27 = scalar_lea.sflag (!%p1441_p9), [#allocation4], %s1493_s7 }
  0x2f   : > { %s1497_s15 = scalar_lea.vmem (!%p1441_p9), [#allocation3], %s1037_s22 }
  0x32   : > { %1300 = dma.done.wait (%p1427_p4), %s376_s27, 32  }
  0x33   : > { %1302 = vsyncadd (%p1427_p4), %s376_s27, 4294967264 }
  0x34   : > { %1304 = dma.done.wait (%p52_p1), [#allocation7], 256  }
  0x35   : > { %1306 = vsyncadd (%p52_p1), [#allocation7], 4294967040  ;;  %s1039_s24 = sshll.u32 %s1493_s7, 2  ;;  %p437_p8 = scmp.lt.s32.totalorder %s1418_s17, 1 }
  0x36   : > { %s1518_s21 = scalar_lea.vmem [#allocation8], %s1039_s24  ;;  %s1520_s29 = scalar_lea.vmem [#allocation9], %s1037_s22 }
  0x37   : > { %s438_s12 = scalar_select %p437_p8, %s1418_s17, 1 }
  0x38   : > { %p1733_p1 = scmp.ne.s32.totalorder %s1418_s17, 0 }
  0x39   : > { %s1057_s28 = sshll.u32 %s438_s12, 5 }
  0x3a   : > { %s441_s25 = scalar_lea.vmem %s1710_s1, %s1057_s28  ;;  %s1516_s26 = scalar_lea.vmem %s1711_s2, %s1057_s28 }
  0x3b   : > { %450 = sbr.rel (%p1733_p1) target bundleno = 66 (0x42), region = 68 }
  0x40   : > { %vm451_vm0 = vcmask 123904   ;;  %v1336_v0 = vmov 0.0  }
  0x41   : > { %452 = vst.msk [vmem:[#allocation2] sm:$0x3] %vm451_vm0, %v1336_v0 }
  0x42 PF: > { %v457_v1 = vld [vmem:[%s441_s25 + $0x10] sm:$0xff]  ;;  %vm469_vm1 = vcmask 64512   ;;  %v455_v2 = vld [vmem:[%s441_s25] sm:$0xff]  ;;  %vm548_vm2 = vcmask 57344   ;;  %v458_v7 = vld [vmem:[%s441_s25 + $0x18] sm:$0xff]  ;;  %vm674_vm3 = vcmask 130048  }
  0x43   : > { %v453_v3 = vld [vmem:[%s1497_s15] sm:$0x1]  ;;  %v484_v4 = vmul.f32 %v457_v1, %v457_v1  ;;  %v482_v5 = vmul.f32 %v455_v2, %v455_v2  ;;  %v456_v8 = vld [vmem:[%s441_s25 + $0x8] sm:$0xff]  ;;  %v454_v9 = vld [vmem:[%s1497_s15 + $0x1] sm:$0x1]  ;;  %v485_v16 = vmul.f32 %v458_v7, %v458_v7  ;;  %s1337_s19 = smov 96  }
  0x44   : > { %v546_v6 = vmul.f32 %v453_v3, %v453_v3  ;;  %v698_v10 = vld [vmem:[%s1713_s4 + $0x8] sm:$0xff]  ;;  %v697_v14 = vld [vmem:[%s1713_s4] sm:$0xff]  ;;  %v483_v17 = vmul.f32 %v456_v8, %v456_v8  ;;  %v547_v18 = vmul.f32 %v454_v9, %v454_v9  ;;  %s1338_s24 = smov 32   ;;  %s1339_s12 = smov 16  }
  0x45   : > { %v492_v11 = vsel %vm469_vm1, %v484_v4, 0.0  ;;  %v486_v12 = vsel %vm469_vm1, %v482_v5, 0.0  ;;  %720 = vmatpush.msra.mxu1 %v698_v10  ;;  %v495_v19 = vsel %vm469_vm1, %v485_v16, 0.0  ;;  %v1133_v21 = vld [vmem:[%s1497_s15 + $0x1] ss:$0 sm:$0xff]  ;;  %s1054_s11 = sshll.u32 %s1418_s17, 1 }
  0x46   : > { %v549_v13 = vsel %vm548_vm2, %v546_v6, 0.0  ;;  %493 = vadd.xlane.f32.xlu2 %v492_v11  ;;  %487 = vadd.xlane.f32.xlu1 %v486_v12  ;;  %v489_v20 = vsel %vm469_vm1, %v483_v17, 0.0  ;;  %v1132_v22 = vld [vmem:[%s1497_s15] ss:$0 sm:$0xff]  ;;  %v552_v23 = vsel %vm548_vm2, %v547_v18, 0.0  ;;  %v467_v25 = vmul.f32 %v1133_v21, %v457_v1  ;;  %s1340_s15 = smov 112  }
  0x47   : > { %550 = vadd.xlane.f32.xlu0 %v549_v13  ;;  %721 = vmatpush.msra.mxu1 %v697_v14  ;;  %v466_v24 = vmul.f32 %v1132_v22, %v456_v8  ;;  %v465_v26 = vmul.f32 %v1132_v22, %v455_v2  ;;  %v468_v30 = vmul.f32 %v1133_v21, %v458_v7  ;;  %s890_s22 = sshll.u32 %s1520_s29, 4  ;;  %s891_s22 = int_to_ptr.vmem [resolvable:$true] %s890_s22 }
  0x48   : > { %v1535_v15 = vld [vmem:[#allocation2] sm:$0x3]  ;;  %v476_v28 = vsel %vm469_vm1, %v467_v25, 0.0 }
  0x49   : > { %1047 = vmatmul.msk.f32.vlgmr.msra.gmra.mxu1 %vm674_vm3, %v1535_v15  ;;  %v473_v27 = vsel %vm469_vm1, %v466_v24, 0.0  ;;  %v470_v29 = vsel %vm469_vm1, %v465_v26, 0.0  ;;  %v479_v31 = vsel %vm469_vm1, %v468_v30, 0.0  ;;  %v653_v26 = vld [vmem:[%s1712_s3 + $0x8] sm:$0xff] }
  0x4a   : > { %691 = vmatpush.msra.mxu0 %v653_v26 }
  0x4e   : > { %496 = vadd.xlane.f32.xlu2 %v495_v19  ;;  %490 = vadd.xlane.f32.xlu1 %v489_v20 }
  0x4f   : > { %553 = vadd.xlane.f32.xlu0 %v552_v23 }
  0x56   : > { %474 = vadd.xlane.f32.xlu1 %v473_v27  ;;  %477 = vadd.xlane.f32.xlu2 %v476_v28  ;;  %v652_v27 = vld [vmem:[%s1712_s3] sm:$0xff] }
  0x57   : > { %471 = vadd.xlane.f32.xlu0 %v470_v29  ;;  %692 = vmatpush.msra.mxu0 %v652_v27 }
  0x5f   : > { %480 = vadd.xlane.f32.xlu0 %v479_v31 }
  0xb9   : > { %v1548_v32 = vpop.xlane.xlu2 %493  ;;  %v488_v33 = vpop.xlane.xlu1 %487 }
  0xba   : > { %1137 = vrsqrt.f32 %v1548_v32  ;;  %v551_v34 = vpop.xlane.xlu0 %550  ;;  %vm505_vm4 = vcmp.eq.f32.partialorder %v488_v33, inf  ;;  %v508_v62 = vand.u32 2147483648, %v488_v33  ;;  %vm507_vm6 = vcmp.eq.f32.partialorder %v488_v33, 0.0 }
  0xbb   : > { %1139 = vrsqrt.f32 %v488_v33  ;;  %vm562_vm5 = vcmp.eq.f32.partialorder %v551_v34, inf  ;;  %v565_v2 = vand.u32 2147483648, %v551_v34  ;;  %vm564_vm7 = vcmp.eq.f32.partialorder %v551_v34, 0.0 }
  0xbc   : > { %1141 = vrsqrt.f32 %v551_v34  ;;  %vm529_vm8 = vcmp.eq.f32.partialorder %v1548_v32, inf  ;;  %vm531_vm9 = vcmp.eq.f32.partialorder %v1548_v32, 0.0  ;;  %v532_v23 = vand.u32 2147483648, %v1548_v32 }
  0xc0   : > { %v1138_v35 = vpop.eup %1137 }
  0xc1   : > { %v1140_v36 = vpop.eup %1139  ;;  %v523_v37 = vmul.f32 %v1138_v35, %v1548_v32  ;;  %v1552_v38 = vpop.xlane.xlu2 %496 }
  0xc2   : > { %v1554_v39 = vpop.xlane.xlu1 %490  ;;  %v1142_v40 = vpop.eup %1141  ;;  %v499_v41 = vmul.f32 %v1140_v36, %v488_v33  ;;  %1143 = vrsqrt.f32 %v1552_v38  ;;  %vm541_vm10 = vcmp.eq.f32.partialorder %v1552_v38, inf  ;;  %vm543_vm15 = vcmp.eq.f32.partialorder %v1552_v38, 0.0 }
  0xc3   : > { %v1557_v42 = vpop.xlane.xlu0 %553  ;;  %v524_v43 = vmul.f32 %v1138_v35, %v523_v37  ;;  %v556_v44 = vmul.f32 %v1142_v40, %v551_v34  ;;  %1145 = vrsqrt.f32 %v1554_v39  ;;  %vm517_vm11 = vcmp.eq.f32.partialorder %v1554_v39, inf }
  0xc4   : > { %v500_v45 = vmul.f32 %v1140_v36, %v499_v41  ;;  %1147 = vrsqrt.f32 %v1557_v42  ;;  %vm519_vm12 = vcmp.eq.f32.partialorder %v1554_v39, 0.0  ;;  %v520_v28 = vand.u32 2147483648, %v1554_v39 }
  0xc5   : > { %v557_v46 = vmul.f32 %v1142_v40, %v556_v44  ;;  %v525_v47 = vmul.f32 0.5, %v524_v43  ;;  %vm574_vm13 = vcmp.eq.f32.partialorder %v1557_v42, inf  ;;  %v544_v37 = vand.u32 2147483648, %v1552_v38 }
  0xc6   : > { %v501_v48 = vmul.f32 0.5, %v500_v45  ;;  %vm576_vm14 = vcmp.eq.f32.partialorder %v1557_v42, 0.0  ;;  %v723_v43 = vpop.f32.mrf.mxu1  ;;  %v1134_v45 = vld [vmem:[%s1715_s6] ss:$0 sm:$0xff] }
  0xc7   : > { %v558_v49 = vmul.f32 0.5, %v557_v46  ;;  %v526_v55 = vsub.f32 1.5, %v525_v47 }
  0xc8   : > { %v1144_v50 = vpop.eup %1143  ;;  %v502_v51 = vsub.f32 1.5, %v501_v48 }
  0xc9   : > { %v1146_v52 = vpop.eup %1145  ;;  %v559_v53 = vsub.f32 1.5, %v558_v49  ;;  %v535_v54 = vmul.f32 %v1144_v50, %v1552_v38  ;;  %v527_v4 = vmul.f32 %v1138_v35, %v526_v55  ;;  %v1597_v49 = vadd.f32 %v1134_v45, %v723_v43 }
  0xca   : > { %v503_v56 = vmul.f32 %v1140_v36, %v502_v51  ;;  %v511_v57 = vmul.f32 %v1146_v52, %v1554_v39  ;;  %v1148_v58 = vpop.eup %1147  ;;  %v577_v36 = vand.u32 2147483648, %v1557_v42 }
  0xcb   : > { %v560_v59 = vmul.f32 %v1142_v40, %v559_v53  ;;  %v536_v60 = vmul.f32 %v1144_v50, %v535_v54  ;;  %v568_v0 = vmul.f32 %v1148_v58, %v1557_v42  ;;  %v528_v17 = vmul.f32 %v527_v4, %v1548_v32  ;;  %747 = vrot.lane.b32.xlu1 %v1597_v49, %s1337_s19  ;;  %s888_s19 = scalar_lea.hbm %s1719_s10, %s1054_s11  ;;  %s1247_s11 = scalar_lea.hbm %s1719_s10, 4 }
  0xcc   : > { %v504_v61 = vmul.f32 %v503_v56, %v488_v33  ;;  %v512_v63 = vmul.f32 %v1146_v52, %v511_v57  ;;  %v662_v57 = vlaneseq  ;;  %s892_s27 = sshll.u32 %s888_s19, 4  ;;  %s893_s27 = int_to_ptr.hbm [resolvable:$true] %s892_s27 }
  0xcd   : > { %v561_v1 = vmul.f32 %v560_v59, %v551_v34  ;;  %v537_v3 = vmul.f32 0.5, %v536_v60  ;;  %v569_v7 = vmul.f32 %v1148_v58, %v568_v0  ;;  %v530_v30 = vsel %vm529_vm8, %v1548_v32, %v528_v17 }
  0xce   : > { %v506_v5 = vsel %vm505_vm4, %v488_v33, %v504_v61  ;;  %v513_v6 = vmul.f32 0.5, %v512_v63  ;;  %v472_v61 = vpop.xlane.xlu0 %471 }
  0xcf   : > { %v563_v8 = vsel %vm562_vm5, %v551_v34, %v561_v1  ;;  %v538_v9 = vsub.f32 1.5, %v537_v3  ;;  %v509_v10 = vsel %vm507_vm6, %v508_v62, %v506_v5  ;;  %v570_v13 = vmul.f32 0.5, %v569_v7 }
  0xd0   : > { %v566_v11 = vsel %vm564_vm7, %v565_v2, %v563_v8  ;;  %v514_v12 = vsub.f32 1.5, %v513_v6  ;;  %v581_v20 = vmax.f32 %v509_v10, 1e-08  ;;  %v1603_v3 = vand.u32 127, %v662_v57 }
  0xd1   : > { %v579_v14 = vmax.f32 %v566_v11, 1e-08  ;;  %v539_v16 = vmul.f32 %v1144_v50, %v538_v9  ;;  %v571_v19 = vsub.f32 1.5, %v570_v13 }
  0xd2   : > { %v515_v18 = vmul.f32 %v1146_v52, %v514_v12  ;;  %v665_v27 = vadd.s32 4294967288, %v1603_v3 }
  0xd3   : > { %v585_v21 = vperm.slane %v579_v14, 0  ;;  %v540_v22 = vmul.f32 %v539_v16, %v1552_v38  ;;  %v572_v25 = vmul.f32 %v1148_v58, %v571_v19 }
  0xd4   : > { %v516_v24 = vmul.f32 %v515_v18, %v1554_v39 }
  0xd5   : > { %v587_v29 = vmul.f32 %v585_v21, %v581_v20  ;;  %v573_v33 = vmul.f32 %v572_v25, %v1557_v42  ;;  %v542_v34 = vsel %vm541_vm10, %v1552_v38, %v540_v22  ;;  %v475_v20 = vpop.xlane.xlu1 %474 }
  0xd6   : > { %v518_v31 = vsel %vm517_vm11, %v1554_v39, %v516_v24  ;;  %v533_v39 = vsel %vm531_vm9, %v532_v23, %v530_v30  ;;  %v545_v46 = vsel %vm543_vm15, %v544_v37, %v542_v34  ;;  %v478_v30 = vpop.xlane.xlu2 %477 }
  0xd7   : > { %v521_v35 = vsel %vm519_vm12, %v520_v28, %v518_v31  ;;  %1149 = vrcp.f32 %v587_v29  ;;  %v575_v41 = vsel %vm574_vm13, %v1557_v42, %v573_v33  ;;  %v583_v50 = vmax.f32 %v533_v39, 1e-08 }
  0xd8   : > { %v582_v40 = vmax.f32 %v521_v35, 1e-08  ;;  %v578_v44 = vsel %vm576_vm14, %v577_v36, %v575_v41  ;;  %v584_v52 = vmax.f32 %v545_v46, 1e-08  ;;  %v600_v59 = vand.u32 2147483647, %v587_v29  ;;  %v481_v36 = vpop.xlane.xlu0 %480 }
  0xd9   : > { %v580_v47 = vmax.f32 %v578_v44, 1e-08  ;;  %v602_v60 = vand.u32 2147483648, %v587_v29  ;;  %vm596_vm1 = vweird.f32 %v587_v29 }
  0xda   : > { %v588_v48 = vmul.f32 %v585_v21, %v582_v40  ;;  %vm1605_vm4 = vcmp.eq.f32.partialorder %v600_v59, 8.507059e+37 }
  0xdb   : > { %v586_v51 = vperm.slane %v580_v47, 0  ;;  %v603_v8 = vor.u32 1.1754944e-38, %v602_v60 }
  0xdc   : > { %1151 = vrcp.f32 %v588_v48  ;;  %v615_v63 = vand.u32 2147483647, %v588_v48  ;;  %v617_v0 = vand.u32 2147483648, %v588_v48  ;;  %vm611_vm5 = vweird.f32 %v588_v48 }
  0xdd   : > { %v1150_v42 = vpop.eup %1149  ;;  %v589_v38 = vmul.f32 %v586_v51, %v583_v50  ;;  %v1600_v53 = vmul.f32 %v586_v51, %v584_v52  ;;  %v1135_v52 = vld [vmem:[%s1714_s5] ss:$0 sm:$0xff] }
  0xde   : > { %v592_v32 = vmul.f32 %v1150_v42, %v587_v29  ;;  %vm597_vm0 = vweird.f32 %v1150_v42  ;;  %vm616_vm7 = vcmp.eq.f32.partialorder %v615_v63, 8.507059e+37  ;;  %v618_v12 = vor.u32 1.1754944e-38, %v617_v0 }
  0xdf   : > { %1153 = vrcp.f32 %v589_v38  ;;  %vm1610_vm6 = vmor %vm596_vm1, %vm597_vm0  ;;  %v630_v16 = vand.u32 2147483647, %v589_v38  ;;  %v632_v17 = vand.u32 2147483648, %v589_v38  ;;  %v647_v22 = vand.u32 2147483648, %v1600_v53 }
  0xe0   : > { %v593_v54 = vsub.f32 1.0, %v592_v32  ;;  %1155 = vrcp.f32 %v1600_v53  ;;  %v645_v25 = vand.u32 2147483647, %v1600_v53  ;;  %vm626_vm11 = vweird.f32 %v589_v38 }
  0xe1   : > { %v633_v31 = vor.u32 1.1754944e-38, %v632_v17  ;;  %vm641_vm13 = vweird.f32 %v1600_v53  ;;  %vm631_vm14 = vcmp.eq.f32.partialorder %v630_v16, 8.507059e+37  ;;  %v648_v35 = vor.u32 1.1754944e-38, %v647_v22 }
  0xe2   : > { %v1152_v55 = vpop.eup %1151  ;;  %v594_v56 = vmul.f32 %v1150_v42, %v593_v54  ;;  %vm646_vm0 = vcmp.eq.f32.partialorder %v645_v25, 8.507059e+37  ;;  %vm667_vm1 = vcmask 130112  }
  0xe3   : > { %v607_v58 = vmul.f32 %v1152_v55, %v588_v48  ;;  %vm612_vm2 = vweird.f32 %v1152_v55 }
  0xe4   : > { %v595_v2 = vadd.f32 %v1150_v42, %v594_v56  ;;  %vm613_vm8 = vmor %vm611_vm5, %vm612_vm2  ;;  %vm672_vm2 = vcmask 1041409  }
  0xe5   : > { %v608_v62 = vsub.f32 1.0, %v607_v58  ;;  %v1154_v1 = vpop.eup %1153 }
  0xe6   : > { %v1156_v4 = vpop.eup %1155  ;;  %v622_v6 = vmul.f32 %v1154_v1, %v589_v38  ;;  %v599_v14 = vsel %vm1610_vm6, %v1150_v42, %v595_v2  ;;  %vm627_vm9 = vweird.f32 %v1154_v1 }
  0xe7   : > { %v609_v5 = vmul.f32 %v1152_v55, %v608_v62  ;;  %v637_v9 = vmul.f32 %v1156_v4, %v1600_v53  ;;  %vm642_vm10 = vweird.f32 %v1156_v4  ;;  %v604_v26 = vsel %vm1605_vm4, %v603_v8, %v599_v14  ;;  %vm628_vm12 = vmor %vm626_vm11, %vm627_vm9  ;;  %v775_v8 = vld [vmem:[#allocation6 + $0x8] sm:$0xff] }
  0xe8   : > { %v623_v13 = vsub.f32 1.0, %v622_v6  ;;  %vm643_vm15 = vmor %vm641_vm13, %vm642_vm10  ;;  %v605_v37 = vmul.f32 %v604_v26, %v472_v61  ;;  %796 = vmatpush.msra.mxu2 %v775_v8 }
  0xe9   : > { %v610_v11 = vadd.f32 %v1152_v55, %v609_v5  ;;  %v638_v18 = vsub.f32 1.0, %v637_v9  ;;  %v774_v9 = vld [vmem:[#allocation6] sm:$0xff] }
  0xea   : > { %v624_v21 = vmul.f32 %v1154_v1, %v623_v13  ;;  %v664_v47 = vperm.slane %v605_v37, %v1603_v3  ;;  %797 = vmatpush.msra.mxu2 %v774_v9 }
  0xeb   : > { %v614_v19 = vsel %vm613_vm8, %v1152_v55, %v610_v11  ;;  %v639_v24 = vmul.f32 %v1156_v4, %v638_v18  ;;  %vm772_vm8 = vcmask 123904  }
  0xec   : > { %v619_v23 = vsel %vm616_vm7, %v618_v12, %v614_v19  ;;  %v625_v28 = vadd.f32 %v1154_v1, %v624_v21 }
  0xed   : > { %v620_v29 = vmul.f32 %v619_v23, %v475_v20  ;;  %v640_v33 = vadd.f32 %v1156_v4, %v639_v24 }
  0xee   : > { %v629_v34 = vsel %vm628_vm12, %v1154_v1, %v625_v28 }
  0xef   : > { %v634_v40 = vsel %vm631_vm14, %v633_v31, %v629_v34  ;;  %v644_v41 = vsel %vm643_vm15, %v1156_v4, %v640_v33  ;;  %v666_v44 = vperm.slane %v620_v29, %v665_v27  ;;  %v815_v29 = vld [vmem:[%s1516_s26 + $0x8] sm:$0xff]  ;;  %v816_v34 = vld [vmem:[%s1516_s26 + $0x10] sm:$0xff] }
  0xf0   : > { %v635_v43 = vmul.f32 %v634_v40, %v478_v30  ;;  %v649_v39 = vsel %vm646_vm0, %v648_v35, %v644_v41  ;;  %v814_v30 = vld [vmem:[%s1516_s26] sm:$0xff] }
  0xf1   : > { %v650_v45 = vmul.f32 %v649_v39, %v481_v36  ;;  %v668_v50 = vsel %vm667_vm1, %v666_v44, %v664_v47  ;;  %v817_v39 = vld [vmem:[%s1516_s26 + $0x18] sm:$0xff] }
  0xf2   : > { %v669_v46 = vperm.slane %v635_v43, %v1603_v3 }
  0xf3   : > { %v670_v48 = vperm.slane %v650_v45, %v665_v27 }
  0xf5   : > { %v671_v51 = vsel %vm667_vm1, %v670_v48, %v669_v46 }
  0xf6   : > { %v673_v42 = vsel %vm672_vm2, %v671_v51, %v668_v50 }
  0xf7   : > { %1046 = vmatmul.msk.f32.vlgmr.msra.gmra.mxu0 %vm674_vm3, %v673_v42 }
 0x13d   : > { %v748_v0 = vpop.permute.xlu1 %747 }
 0x174   : > { %v694_v32 = vpop.f32.mrf.mxu0 }
 0x175   : > { %v695_v38 = vadd.f32 %v1135_v52, %v694_v32 }
 0x177   : > { %v726_v53 = vadd.f32 %v1597_v49, %v695_v38 }
 0x179   : > { %v1048_v54 = vmul.f32 -1.442695, %v726_v53 }
 0x17b   : > { %1157 = vpow2.f32 %v1048_v54 }
 0x181   : > { %v1158_v55 = vpop.eup %1157 }
 0x182   : > { %v730_v56 = vadd.f32 1.0, %v1158_v55 }
 0x184   : > { %1159 = vrcp.f32 %v730_v56  ;;  %v742_v60 = vand.u32 2147483648, %v730_v56  ;;  %v740_v62 = vand.u32 2147483647, %v730_v56  ;;  %vm736_vm5 = vweird.f32 %v730_v56 }
 0x186   : > { %v743_v1 = vor.u32 1.1754944e-38, %v742_v60  ;;  %vm741_vm7 = vcmp.eq.f32.partialorder %v740_v62, 8.507059e+37 }
 0x18a   : > { %v1160_v57 = vpop.eup %1159 }
 0x18b   : > { %v732_v58 = vmul.f32 %v1160_v57, %v730_v56  ;;  %vm737_vm4 = vweird.f32 %v1160_v57 }
 0x18c   : > { %vm738_vm6 = vmor %vm736_vm5, %vm737_vm4 }
 0x18d   : > { %v733_v59 = vsub.f32 1.0, %v732_v58 }
 0x18f   : > { %v734_v61 = vmul.f32 %v1160_v57, %v733_v59 }
 0x191   : > { %v735_v63 = vadd.f32 %v1160_v57, %v734_v61 }
 0x193   : > { %v739_v2 = vsel %vm738_vm6, %v1160_v57, %v735_v63 }
 0x194   : > { %v744_v49 = vsel %vm741_vm7, %v743_v1, %v739_v2 }
 0x195   : > { %v750_v4 = vmul.f32 %v748_v0, %v744_v49  ;;  %v757_v11 = vsub.f32 1.0, %v744_v49 }
 0x197   : > { %752 = vrot.lane.b32.xlu2 %v750_v4, %s1338_s24 }
 0x19f   : > { %763 = vrot.lane.b32.xlu2 %v1535_v15, %s1339_s12  ;;  %v1136_v15 = vld [vmem:[%s1717_s8] ss:$0 sm:$0xff]  ;;  %s861_s12 = scalar_lea.sflag [#allocation10], %s1493_s7 }
 0x1f1   : > { %v753_v5 = vpop.permute.xlu2 %752 }
 0x1f2   : > { %v755_v6 = vadd.f32 %v753_v5, %v695_v38 }
 0x1f4   : > { %1161 = vtanh.f32 %v755_v6 }
 0x1f9   : > { %v764_v10 = vpop.permute.xlu2 %763 }
 0x1fa   : > { %v1162_v7 = vpop.eup %1161  ;;  %v766_v13 = vmul.f32 %v764_v10, %v744_v49 }
 0x1fb   : > { %759 = vrot.lane.b32.xlu0 %v1162_v7, %s1340_s15 }
 0x26d   : > { %v760_v12 = vpop.permute.xlu0 %759 }
 0x26e   : > { %v762_v14 = vmul.f32 %v760_v12, %v757_v11 }
 0x270   : > { %v767_v16 = vadd.f32 %v766_v13, %v762_v14 }
 0x272   : > { %769 = vrot.lane.b32.xlu1 %v767_v16, %s1340_s15  ;;  %s1241_s15 = sshra.s32 %s893_s27, 4  ;;  %s1242_s15 = int_to_ptr.hbm [resolvable:$true] %s1241_s15 }
 0x273   : > { %s1243_s28 = scalar_lea.hbm %s1242_s15, 2  ;;  %p1248_p11 = scmp.lt.s32.totalorder %s1242_s15, %s1719_s10 }
 0x274   : > { %p1244_p4 = scmp.ne.s32.totalorder %s1242_s15, %s1243_s28  ;;  %p1249_p2 = scmp.lt.s32.totalorder %s1247_s11, %s1243_s28 }
 0x276   : > { %p1245_p9 = pnand %p1244_p4, %p1465_p10  ;;  %p1250_p13 = por %p1249_p2, %p1248_p11 }
 0x278   : > { %p1246_p12 = pneg %p1245_p9 }
 0x27a   : > { %p1251_p0 = pnand %p1250_p13, %p1246_p12 }
 0x2e4   : > { %v770_v17 = vpop.permute.xlu1 %769 }
 0x2e5   : > { %773 = vst.msk [vmem:[#allocation2] sm:$0x3] %vm772_vm8, %v770_v17  ;;  %1049 = vmatmul.msk.f32.vlgmr.msra.gmra.mxu2 %vm674_vm3, %v770_v17 }
 0x368   : > { %v799_v18 = vpop.f32.mrf.mxu2 }
 0x369   : > { %v800_v19 = vadd.f32 %v1136_v15, %v799_v18 }
 0x36b   : > { %v802_v20 = vsel %vm772_vm8, %v800_v19, -inf }
 0x36c   : > { %803 = vmax.xlane.f32.xlu0 %v802_v20 }
 0x3df   : > { %v804_v21 = vpop.xlane.xlu0 %803 }
 0x3e0   : > { %v805_v22 = vsub.f32 %v800_v19, %v804_v21 }
 0x3e2   : > { %v806_v23 = vmul.f32 1.442695, %v805_v22 }
 0x3e4   : > { %1163 = vpow2.f32 %v806_v23 }
 0x3ea   : > { %v1164_v24 = vpop.eup %1163 }
 0x3eb   : > { %v808_v25 = vsel %vm772_vm8, %v1164_v24, 0.0 }
 0x3ec   : > { %809 = vadd.xlane.f32.xlu2 %v808_v25 }
 0x45f   : > { %v810_v26 = vpop.xlane.xlu2 %809 }
 0x460   : > { %1165 = vrcp.f32 %v810_v26 }
 0x466   : > { %v1166_v27 = vpop.eup %1165 }
 0x467   : > { %v812_v28 = vmul.f32 %v1166_v27, %v1164_v24 }
 0x469   : > { %813 = vst.msk [vmem:[%s1520_s29] sm:$0x3] %vm772_vm8, %v812_v28  ;;  %v820_v31 = vperm.slane %v812_v28, 0  ;;  %v819_v33 = vrot.slane %v812_v28, 1 }
 0x46b   : > { %v825_v35 = vmul.f32 %v820_v31, %v815_v29  ;;  %v824_v36 = vmul.f32 %v820_v31, %v814_v30  ;;  %v821_v37 = vperm.slane %v819_v33, 0 }
 0x46d   : > { %v831_v40 = vsel %vm674_vm3, %v825_v35, 0.0  ;;  %v828_v41 = vsel %vm674_vm3, %v824_v36, 0.0  ;;  %v826_v43 = vmul.f32 %v821_v37, %v816_v34  ;;  %v827_v45 = vmul.f32 %v821_v37, %v817_v39 }
 0x46e   : > { %832 = vadd.xlane.f32.xlu0 %v831_v40  ;;  %829 = vadd.xlane.f32.xlu1 %v828_v41 }
 0x46f   : > { %v834_v44 = vsel %vm674_vm3, %v826_v43, 0.0 }
 0x470   : > { %835 = vadd.xlane.f32.xlu2 %v834_v44 }
 0x471   : > { %1254 = shalt.err (!%p1251_p0)
}
 0x472   : > { %1067 = dma.vmem_to_hbm [thread:$0]  (%p1465_p10), %s891_s22, 32, %s893_s27, %s861_s12   ;;  %v837_v46 = vsel %vm674_vm3, %v827_v45, 0.0  ;;  %vm852_vm9 = vcmask 58368  }
 0x473   : > { %s1059_s29 = sshll.u32 %s1418_s17, 2  ;;  %s873_s27 = sshll.u32 %s1518_s21, 4  ;;  %s874_s27 = int_to_ptr.vmem [resolvable:$true] %s873_s27 }
 0x474   : > { %s872_s22 = scalar_lea.hbm %s1718_s9, %s1059_s29  ;;  %s856_s17 = scalar_lea.sflag [#allocation5], %s1493_s7 }
 0x475   : > { %s875_s12 = sshll.u32 %s872_s22, 4  ;;  %s1275_s25 = scalar_lea.hbm %s1718_s9, 8  ;;  %s876_s12 = int_to_ptr.hbm [resolvable:$true] %s875_s12 }
 0x476   : > { %838 = vadd.xlane.f32.xlu1 %v837_v46  ;;  %s1269_s28 = sshra.s32 %s876_s12, 4  ;;  %s1270_s28 = int_to_ptr.hbm [resolvable:$true] %s1269_s28 }
 0x477   : > { %s1271_s26 = scalar_lea.hbm %s1270_s28, 4  ;;  %p1276_p8 = scmp.lt.s32.totalorder %s1270_s28, %s1718_s9 }
 0x478   : > { %p1272_p3 = scmp.ne.s32.totalorder %s1270_s28, %s1271_s26  ;;  %p1277_p1 = scmp.lt.s32.totalorder %s1275_s25, %s1271_s26 }
 0x47a   : > { %p1273_p5 = pnand %p1272_p3, %p1465_p10  ;;  %p1278_p4 = por %p1277_p1, %p1276_p8 }
 0x47c   : > { %p1274_p7 = pneg %p1273_p5 }
 0x47e   : > { %p1279_p9 = pnand %p1278_p4, %p1274_p7 }
 0x4e1   : > { %v833_v47 = vpop.xlane.xlu0 %832  ;;  %v830_v48 = vpop.xlane.xlu1 %829 }
 0x4e2   : > { %v845_v50 = vperm.slane %v833_v47, %v1603_v3  ;;  %v844_v51 = vperm.slane %v830_v48, %v1603_v3 }
 0x4e3   : > { %v836_v52 = vpop.xlane.xlu2 %835 }
 0x4e4   : > { %v848_v42 = vsel %vm672_vm2, %v845_v50, %v844_v51  ;;  %v846_v38 = vperm.slane %v836_v52, %v1603_v3 }
 0x4e5   : > { %853 = vst.msk [vmem:[%s1518_s21] sm:$0x3] %vm852_vm9, %v848_v42 }
 0x4e9   : > { %v839_v32 = vpop.xlane.xlu1 %838 }
 0x4ea   : > { %v847_v53 = vperm.slane %v839_v32, %v1603_v3 }
 0x4ec   : > { %v849_v54 = vsel %vm672_vm2, %v847_v53, %v846_v38 }
 0x4ed   : > { %854 = vst.msk [vmem:[%s1518_s21 + $0x2] sm:$0x3] %vm852_vm9, %v849_v54 }
 0x4ee   : > { %1282 = shalt.err (!%p1279_p9)
}
 0x4ef   : > { %s1341_s7 = smov 2  }
 0x4f0   : > { %1066 = dma.vmem_to_hbm [thread:$0]  (%p1465_p10), %s874_s27, 64, %s876_s12, %s856_s17, %s1338_s24, %s1338_s24, %s1341_s7  }
 0x4f1 PF: > { %s904_s21 = sand.u32 1, %s1317_s13   ;;  %p1738_p12 = scmp.ge.s32.totalorder %s1329_s16, 2 }
 0x4f2   : > { %s905_s19 = scalar_lea.sflag [#allocation5], %s904_s21 }
 0x4f3   : > { %p1079_p11 = pnand %p1738_p12, %p1432_p6 }
 0x4f5   : > { %p1080_p2 = pneg %p1079_p11 }
 0x4f7   : > { %1308 = dma.done.wait (%p1080_p2), %s905_s19, 64  }
 0x4f8   : > { %1310 = vsyncadd (%p1080_p2), %s905_s19, 4294967232  ;;  %s915_s15 = scalar_lea.sflag [#allocation10], %s904_s21 }
 0x4f9   : > { %1312 = dma.done.wait (%p1080_p2), %s915_s15, 32  }
 0x4fa   : > { %1314 = vsyncadd (%p1080_p2), %s915_s15, 4294967264  ;;  %s1739_s16 = sld [smem:[#allocation16_spill]]  ;;  %s1742_s13 = smov %s1321_s14 }
 0x4fb   : > { %s1740_s18 = sld [smem:[#allocation15_spill]] }
 0x4fc   : > { %s1741_s15 = sld [smem:[#allocation17_spill]] }
 0x500   : > { %p28_p10 = scmp.ge.s32.totalorder %s1739_s16, 4  }
 0x501   : > { %s1743_s14 = smov %s1740_s18 }
 0x502   :  { %30 = sbr.rel (!%p28_p10) target bundleno = 10 (0xa), region = 132 }
 0x507   :  { %921 = vsyncpa [#allocation4], 1 }
 0x508   :  { %923 = vsyncpa [#allocation4 + $0x1], 1 }
 0x509   :  { %924 = vsyncpa [#allocation7], 1 }
 0x50a   :  { %925 = vsyncpa [#allocation5], 1 }
 0x50b   :  { %927 = vsyncpa [#allocation5 + $0x1], 1 }
 0x50c   :  { %928 = vsyncpa [#allocation10], 1 }
 0x50d   :  { %930 = vsyncpa [#allocation10 + $0x1], 1 }

</bundles_post_ra>
